<compile_context>
chip_gen: v6e
topology: v6e:2x2x1
jax: 0.10.0
libtpu: 0.0.40
codegen_flags: <defaults>
</compile_context>

<pallas_src>
import functools

import jax
import jax.numpy as jnp
from jax.experimental import pallas as pl
from jax.experimental.pallas import tpu as pltpu


_NEG_BIG = -1e30  # finite "-inf" so padded-tile math never produces NaN


def _round_up(x, m):
    return (x + m - 1) // m * m


# ----------------------------------------------------------------------------
# Training kernel: per (batch_tile i, class_tile j) step
#   s       = x_tile @ W_tile.T           (one fused MXU pass, f32 accumulate)
#   sim     = sum_b softmax_bag(s_b) * s_b (streaming over bag slices of s)
#   online LSE / target-logit accumulation across class tiles; at the last
#   class tile emit per-sample weighted CE (tm, 1).
# ----------------------------------------------------------------------------
def _train_kernel(x_ref, w_ref, mask_ref, tgt_ref, twt_ref, out_ref,
                  m_sc, l_sc, t_sc, *, bag_size, tc):
    j = pl.program_id(1)

    @pl.when(j == 0)
    def _init():
        m_sc[...] = jnp.full(m_sc.shape, _NEG_BIG, dtype=jnp.float32)
        l_sc[...] = jnp.zeros(l_sc.shape, dtype=jnp.float32)
        t_sc[...] = jnp.zeros(t_sc.shape, dtype=jnp.float32)

    x = x_ref[...]                                        # (tm, F_pad) bf16
    w = w_ref[0]                                          # (bag*tc, F_pad) bf16

    # Single fused matmul for all bags of this class tile (MXU, f32 accum).
    s = jax.lax.dot_general(
        x, w, dimension_numbers=(((1,), (1,)), ((), ())),
        preferred_element_type=jnp.float32)               # (tm, bag*tc)

    # Streaming softmax over the bag axis; per-bag score maps are static
    # lane-aligned slices of s (tc is a multiple of 128).
    s0 = s[:, 0:tc]
    mb = s0
    denom = jnp.ones_like(s0)
    num = s0
    for b in range(1, bag_size):
        sb = s[:, b * tc:(b + 1) * tc]
        mb_new = jnp.maximum(mb, sb)
        scale = jnp.exp(mb - mb_new)
        e_b = jnp.exp(sb - mb_new)
        denom = denom * scale + e_b
        num = num * scale + e_b * sb
        mb = mb_new
    sim = num * pl.reciprocal(denom, approx=True)         # (tm, tc)

    # Additive pad mask (0 on real classes, -1e30 on padded columns).
    sim_m = sim + mask_ref[...]

    # Online logsumexp over class tiles.
    m_old = m_sc[...]                                     # (tm, 1)
    m_new = jnp.maximum(m_old, jnp.max(sim_m, axis=-1, keepdims=True))
    p = jnp.exp(sim_m - m_new)                            # padded cols -> 0
    l_sc[...] = l_sc[...] * jnp.exp(m_old - m_new) + \
        jnp.sum(p, axis=-1, keepdims=True)
    m_sc[...] = m_new

    # Target-class logit (the one-hot hits exactly one class tile overall).
    cls_ids = jax.lax.broadcasted_iota(jnp.int32, sim.shape, 1) + j * tc
    onehot = (cls_ids == tgt_ref[...]).astype(jnp.float32)
    t_sc[...] = t_sc[...] + jnp.sum(onehot * sim, axis=-1, keepdims=True)

    @pl.when(j == pl.num_programs(1) - 1)
    def _finish():
        lse = m_sc[...] + jnp.log(l_sc[...])
        out_ref[...] = (lse - t_sc[...]) * twt_ref[...]   # per-sample wCE


# ----------------------------------------------------------------------------
# Eval kernel: fused matmul, max over bag -> (tm, tc).  x is already
# L2-normalized (f32, in the wrapper) before its bf16 cast.
# ----------------------------------------------------------------------------
def _eval_kernel(x_ref, w_ref, out_ref, *, bag_size, tc):
    x = x_ref[...]                                        # (tm, F_pad) bf16
    w = w_ref[0]                                          # (bag*tc, F_pad) bf16
    s = jax.lax.dot_general(
        x, w, dimension_numbers=(((1,), (1,)), ((), ())),
        preferred_element_type=jnp.float32)               # (tm, bag*tc)
    out = s[:, 0:tc]
    for b in range(1, bag_size):
        out = jnp.maximum(out, s[:, b * tc:(b + 1) * tc])
    out_ref[...] = out.astype(out_ref.dtype)


class SubCenter:
    """JAX/Pallas port of the PyTorch Sub_Center module (forward only)."""

    def __init__(self, num_features, num_classes, bag_size=3, beta=0.033,
                 alpha=0.05, key=None, class_tile=1024, batch_tile=256):
        self.num_features = num_features
        self.num_classes = num_classes
        self.bag_size = bag_size
        self.alpha = alpha          # unused in forward (matches PyTorch module)
        self.beta = beta            # unused in forward (matches PyTorch module)
        if key is None:
            key = jax.random.PRNGKey(0)
        # em ~ torch.randn(num_classes + 1, bag_size, num_features)  (f32 param)
        self.em = jax.random.normal(
            key, (num_classes + 1, bag_size, num_features), dtype=jnp.float32)
        self.training = True

        c_real = num_classes + 1
        # F is the lane/contraction dim of both operands: pad to 128 multiple.
        self.f_pad = _round_up(num_features, 128)
        # Lane-dense class tile; large tiles amortize per-grid-step overhead
        # (~0.35 us) and improve achieved DMA bandwidth.
        tc = min(class_tile, _round_up(c_real, 128))
        # VMEM guard: keep the double-buffered bf16 weight block under ~12 MiB
        # so the whole working set stays well inside v7x's 64 MiB VMEM.
        while tc > 256 and 2 * bag_size * tc * self.f_pad * 2 > 12 * 1024 * 1024:
            tc //= 2
        self.tc = tc
        self.c_pad = _round_up(c_real, tc)
        self.batch_tile = max(16, batch_tile)
        self._refresh_kernel_weights()

    # NOTE: must be re-called whenever self.em changes (e.g. center updates);
    # the kernels read the relaid-out bf16 copy, not self.em.
    def _refresh_kernel_weights(self):
        """One-time relayout: (class_tiles, bag*tc, F_pad) bf16 + pad mask."""
        c_real = self.num_classes + 1
        bag, tc, c_pad = self.bag_size, self.tc, self.c_pad
        f, f_pad = self.num_features, self.f_pad
        w = jnp.transpose(self.em, (1, 0, 2)).astype(jnp.bfloat16)   # (B, C, F)
        w = jnp.pad(w, ((0, 0), (0, c_pad - c_real), (0, f_pad - f)))
        w = w.reshape(bag, c_pad // tc, tc, f_pad)
        w = jnp.transpose(w, (1, 0, 2, 3)).reshape(c_pad // tc, bag * tc, f_pad)
        self._w_pad = w                                   # (C_tiles, bag*tc, F_pad)
        mask = jnp.where(jnp.arange(c_pad) < c_real, 0.0, _NEG_BIG)
        self._cls_mask = mask.astype(jnp.float32).reshape(1, c_pad)

    def _choose_tm(self, bs):
        """Batch tile: multiple of 16, capped, and >=2 tiles when possible."""
        bs16 = _round_up(bs, 16)
        tm = min(self.batch_tile, bs16)
        if bs16 // tm < 2 and bs16 >= 32:
            tm = _round_up(bs16 // 2, 16)      # keep v7x megacore sharding alive
        return tm

    def _vmem_limit(self, tm, train):
        """Explicit scoped-VMEM budget from the tile arithmetic."""
        f, tc, bag = self.f_pad, self.tc, self.bag_size
        w_bytes = 2 * bag * tc * f * 2                    # double-buffered weights
        x_bytes = 2 * tm * f * 2
        out_bytes = 2 * tm * (4 if train else tc * 2)
        tmp_bytes = tm * tc * 4 * (bag + 8)               # fused scores + f32 temps
        est = w_bytes + x_bytes + out_bytes + tmp_bytes + (2 << 20)
        return int(min(max(est, 32 * 1024 * 1024), 64 * 1024 * 1024))

    def forward(self, inputs, targets=None, target_weights=None, epoch=None):
        bs = inputs.shape[0]
        c_real = self.num_classes + 1
        tc, c_pad, f_pad = self.tc, self.c_pad, self.f_pad
        bag = self.bag_size

        tm = self._choose_tm(bs)
        bs_pad = _round_up(bs, tm)
        grid = (bs_pad // tm, c_pad // tc)

        if not self.training:
            # F.normalize in f32 BEFORE the bf16 cast (eps matches torch 1e-12),
            # hoisted out of the kernel so it runs once per row, not per tile.
            xn = inputs.astype(jnp.float32)
            xn = xn / jnp.maximum(
                jnp.linalg.norm(xn, axis=-1, keepdims=True), 1e-12)
            x = xn.astype(jnp.bfloat16)
            x = jnp.pad(x, ((0, bs_pad - bs), (0, f_pad - self.num_features)))

            kernel = functools.partial(_eval_kernel, bag_size=bag, tc=tc)
            out = pl.pallas_call(
                kernel,
                out_shape=jax.ShapeDtypeStruct((bs_pad, c_pad), jnp.bfloat16),
                grid_spec=pltpu.PrefetchScalarGridSpec(
                    num_scalar_prefetch=0,
                    grid=grid,
                    in_specs=[
                        pl.BlockSpec((tm, f_pad), lambda i, j: (i, 0)),
                        pl.BlockSpec((1, bag * tc, f_pad),
                                     lambda i, j: (j, 0, 0)),
                    ],
                    out_specs=pl.BlockSpec((tm, tc), lambda i, j: (i, j))),
                compiler_params=pltpu.CompilerParams(
                    dimension_semantics=("parallel", "parallel"),
                    vmem_limit_bytes=self._vmem_limit(tm, train=False)),
            )(x, self._w_pad)
            # bf16 similarities; callers needing f32 can upcast themselves.
            return out[:bs, :c_real]

        x = inputs.astype(jnp.bfloat16)
        x = jnp.pad(x, ((0, bs_pad - bs), (0, f_pad - self.num_features)))

        tgt = jnp.zeros((bs_pad, 1), jnp.int32)
        tgt = tgt.at[:bs, 0].set(targets.astype(jnp.int32))
        twt = jnp.zeros((bs_pad, 1), jnp.float32)
        twt = twt.at[:bs, 0].set(target_weights.astype(jnp.float32))

        kernel = functools.partial(_train_kernel, bag_size=bag, tc=tc)
        per_sample = pl.pallas_call(
            kernel,
            out_shape=jax.ShapeDtypeStruct((bs_pad, 1), jnp.float32),
            grid_spec=pltpu.PrefetchScalarGridSpec(
                num_scalar_prefetch=0,
                grid=grid,
                in_specs=[
                    pl.BlockSpec((tm, f_pad), lambda i, j: (i, 0)),
                    pl.BlockSpec((1, bag * tc, f_pad), lambda i, j: (j, 0, 0)),
                    pl.BlockSpec((1, tc), lambda i, j: (0, j)),
                    pl.BlockSpec((tm, 1), lambda i, j: (i, 0)),
                    pl.BlockSpec((tm, 1), lambda i, j: (i, 0)),
                ],
                out_specs=pl.BlockSpec((tm, 1), lambda i, j: (i, 0)),
                scratch_shapes=[pltpu.VMEM((tm, 1), jnp.float32),   # running max
                                pltpu.VMEM((tm, 1), jnp.float32),   # running sumexp
                                pltpu.VMEM((tm, 1), jnp.float32)]), # target logit
            compiler_params=pltpu.CompilerParams(
                dimension_semantics=("parallel", "arbitrary"),
                vmem_limit_bytes=self._vmem_limit(tm, train=True)),
        )(x, self._w_pad, self._cls_mask, tgt, twt)
        # Padded rows carry target_weight 0, so the sum over bs_pad rows
        # divided by the real batch size is exactly the PyTorch .mean().
        return jnp.sum(per_sample) / bs

    __call__ = forward


# ----------------------------------------------------------------------------
# Pure-JAX f32 reference (mirrors the PyTorch code) for correctness checks.
# ----------------------------------------------------------------------------
def _train_loss_ref(em, x, targets, target_weights):
    c, b, f = em.shape
    bs = x.shape[0]
    scores = (x @ em.reshape(-1, f).T).reshape(bs, c, b)
    prob = jax.nn.softmax(scores, axis=-1)
    sim = jnp.sum(prob * scores, axis=-1)
    logp = jax.nn.log_softmax(sim, axis=-1)
    ce = -jnp.take_along_axis(
        logp, targets[:, None].astype(jnp.int32), axis=-1)[:, 0]
    return jnp.mean(ce * target_weights)


def _eval_ref(em, x):
    c, b, f = em.shape
    bs = x.shape[0]
    xn = x / jnp.maximum(jnp.linalg.norm(x, axis=-1, keepdims=True), 1e-12)
    scores = (xn @ em.reshape(-1, f).T).reshape(bs, c, b)
    return jnp.max(scores, axis=-1)


if __name__ == "__main__":
    num_features = 32
    num_classes = 8
    bag_size = 3
    batch = 8

    key = jax.random.PRNGKey(0)
    k_em, k_x, k_t, k_w = jax.random.split(key, 4)

    module = SubCenter(num_features, num_classes, bag_size=bag_size, key=k_em)

    inputs = jax.random.normal(k_x, (batch, num_features), dtype=jnp.float32)
    targets = jax.random.randint(k_t, (batch,), 0, num_classes + 1,
                                 dtype=jnp.int32)
    target_weights = jax.random.uniform(k_w, (batch,), dtype=jnp.float32)

    # Training-mode forward (scalar weighted-CE mean).  bf16 matmul operands
    # => compare against the f32 reference with loosened tolerances.
    module.training = True
    loss = module(inputs, targets, target_weights)
    loss = jax.block_until_ready(loss)
    loss_ref = _train_loss_ref(module.em, inputs, targets, target_weights)
    assert jnp.allclose(loss, loss_ref, rtol=5e-2, atol=5e-2), (loss, loss_ref)

    # Eval-mode forward (per-class similarities, bf16 output).
    module.training = False
    sims = module(inputs)
    sims = jax.block_until_ready(sims)
    sims_ref = _eval_ref(module.em, inputs)
    assert sims.shape == sims_ref.shape
    assert jnp.allclose(sims.astype(jnp.float32), sims_ref,
                        rtol=5e-2, atol=5e-2)

    print("KERNEL_OK")
</pallas_src>

<mosaic_0001>
module attributes {stable_mosaic.version = 11 : i64} {
  func.func @_train_kernel(%arg0: i32, %arg1: i32, %arg2: memref<16x128xbf16, #tpu.memory_space<vmem>>, %arg3: memref<1x384x128xbf16, #tpu.memory_space<vmem>>, %arg4: memref<1x128xf32, #tpu.memory_space<vmem>>, %arg5: memref<16x1xi32, #tpu.memory_space<vmem>>, %arg6: memref<16x1xf32, #tpu.memory_space<vmem>>, %arg7: memref<16x1xf32, #tpu.memory_space<vmem>>, %arg8: memref<16x1xf32, #tpu.memory_space<vmem>>, %arg9: memref<16x1xf32, #tpu.memory_space<vmem>>, %arg10: memref<16x1xf32, #tpu.memory_space<vmem>>) attributes {dimension_semantics = [#tpu.dimension_semantics<parallel>, #tpu.dimension_semantics<arbitrary>], iteration_bounds = array<i64: 1, 1>, scalar_prefetch = 0 : i64, scratch_operands = 3 : i64, tpu.core_type = #tpu.core_type<tc>, window_params = [{transform_indices = @transform_0, window_bounds = array<i64: 16, 128>}, {transform_indices = @transform_1, window_bounds = array<i64: 1, 384, 128>}, {transform_indices = @transform_2, window_bounds = array<i64: 1, 128>}, {transform_indices = @transform_3, window_bounds = array<i64: 16, 1>}, {transform_indices = @transform_4, window_bounds = array<i64: 16, 1>}, {transform_indices = @transform_5, window_bounds = array<i64: 16, 1>}]} {
    %c0_i32 = arith.constant 0 : i32
    %0 = arith.cmpi eq, %arg1, %c0_i32 : i32
    %1 = arith.extui %0 : i1 to i32
    %c0_i32_0 = arith.constant 0 : i32
    %2 = arith.cmpi ne, %1, %c0_i32_0 : i32
    scf.if %2 {
      %cst_27 = arith.constant -1.000000e+30 : f32
      %70 = vector.broadcast %cst_27 : f32 to vector<16x1xf32>
      %c0_28 = arith.constant 0 : index
      %c0_29 = arith.constant 0 : index
      %71 = vector.load %arg8[%c0_28, %c0_29] : memref<16x1xf32, #tpu.memory_space<vmem>>, vector<16x1xf32>
      tpu.vector_store %arg8[%c0_28, %c0_29], %70 {strides = array<i32>} : memref<16x1xf32, #tpu.memory_space<vmem>>, vector<16x1xf32>,
      %cst_30 = arith.constant 0.000000e+00 : f32
      %72 = vector.broadcast %cst_30 : f32 to vector<16x1xf32>
      %c0_31 = arith.constant 0 : index
      %c0_32 = arith.constant 0 : index
      %73 = vector.load %arg9[%c0_31, %c0_32] : memref<16x1xf32, #tpu.memory_space<vmem>>, vector<16x1xf32>
      tpu.vector_store %arg9[%c0_31, %c0_32], %72 {strides = array<i32>} : memref<16x1xf32, #tpu.memory_space<vmem>>, vector<16x1xf32>,
      %cst_33 = arith.constant 0.000000e+00 : f32
      %74 = vector.broadcast %cst_33 : f32 to vector<16x1xf32>
      %c0_34 = arith.constant 0 : index
      %c0_35 = arith.constant 0 : index
      %75 = vector.load %arg10[%c0_34, %c0_35] : memref<16x1xf32, #tpu.memory_space<vmem>>, vector<16x1xf32>
      tpu.vector_store %arg10[%c0_34, %c0_35], %74 {strides = array<i32>} : memref<16x1xf32, #tpu.memory_space<vmem>>, vector<16x1xf32>,
    } else {
    }
    %c0 = arith.constant 0 : index
    %c0_1 = arith.constant 0 : index
    %3 = vector.load %arg2[%c0, %c0_1] : memref<16x128xbf16, #tpu.memory_space<vmem>>, vector<16x128xbf16>
    %c0_2 = arith.constant 0 : index
    %c0_3 = arith.constant 0 : index
    %c0_4 = arith.constant 0 : index
    %4 = vector.load %arg3[%c0_2, %c0_3, %c0_4] : memref<1x384x128xbf16, #tpu.memory_space<vmem>>, vector<1x384x128xbf16>
    %5 = vector.shape_cast %4 : vector<1x384x128xbf16> to vector<384x128xbf16>
    %cst = arith.constant dense<0.000000e+00> : vector<16x384xf32>
    %6 = tpu.matmul %3, %5, %cst {dimension_numbers = #tpu.dot_dimension_numbers<[1], [1], [0], [0], [0, 0, 1, 0], [], []>} : vector<16x128xbf16>, vector<384x128xbf16>, vector<16x384xf32> -> vector<16x384xf32>
    %7 = vector.extract_strided_slice %6 {offsets = [0, 0], sizes = [16, 128], strides = [1, 1]} : vector<16x384xf32> to vector<16x128xf32>
    %cst_5 = arith.constant 1.000000e+00 : f32
    %8 = vector.broadcast %cst_5 : f32 to vector<16x128xf32>
    %9 = vector.extract_strided_slice %6 {offsets = [0, 128], sizes = [16, 128], strides = [1, 1]} : vector<16x384xf32> to vector<16x128xf32>
    %10 = arith.maximumf %7, %9 : vector<16x128xf32>
    %11 = arith.subf %7, %10 : vector<16x128xf32>
    %12 = math.exp %11 : vector<16x128xf32>
    %13 = arith.subf %9, %10 : vector<16x128xf32>
    %14 = math.exp %13 : vector<16x128xf32>
    %15 = arith.mulf %8, %12 : vector<16x128xf32>
    %16 = arith.addf %15, %14 : vector<16x128xf32>
    %17 = arith.mulf %7, %12 : vector<16x128xf32>
    %18 = arith.mulf %14, %9 : vector<16x128xf32>
    %19 = arith.addf %17, %18 : vector<16x128xf32>
    %20 = vector.extract_strided_slice %6 {offsets = [0, 256], sizes = [16, 128], strides = [1, 1]} : vector<16x384xf32> to vector<16x128xf32>
    %21 = arith.maximumf %10, %20 : vector<16x128xf32>
    %22 = arith.subf %10, %21 : vector<16x128xf32>
    %23 = math.exp %22 : vector<16x128xf32>
    %24 = arith.subf %20, %21 : vector<16x128xf32>
    %25 = math.exp %24 : vector<16x128xf32>
    %26 = arith.mulf %16, %23 : vector<16x128xf32>
    %27 = arith.addf %26, %25 : vector<16x128xf32>
    %28 = arith.mulf %19, %23 : vector<16x128xf32>
    %29 = arith.mulf %25, %20 : vector<16x128xf32>
    %30 = arith.addf %28, %29 : vector<16x128xf32>
    %31 = tpu.reciprocal %27 {approx = true} : vector<16x128xf32> -> vector<16x128xf32>
    %32 = arith.mulf %30, %31 : vector<16x128xf32>
    %c0_6 = arith.constant 0 : index
    %c0_7 = arith.constant 0 : index
    %33 = vector.load %arg4[%c0_6, %c0_7] : memref<1x128xf32, #tpu.memory_space<vmem>>, vector<1x128xf32>
    %34 = vector.broadcast %33 : vector<1x128xf32> to vector<16x128xf32>
    %35 = arith.addf %32, %34 : vector<16x128xf32>
    %c0_8 = arith.constant 0 : index
    %c0_9 = arith.constant 0 : index
    %36 = vector.load %arg8[%c0_8, %c0_9] : memref<16x1xf32, #tpu.memory_space<vmem>>, vector<16x1xf32>
    %cst_10 = arith.constant dense<0xFF800000> : vector<16xf32>
    %37 = vector.multi_reduction <maximumf>, %35, %cst_10 [1] : vector<16x128xf32> to vector<16xf32>
    %38 = vector.shape_cast %37 : vector<16xf32> to vector<16x1xf32>
    %39 = arith.maximumf %36, %38 : vector<16x1xf32>
    %40 = vector.broadcast %39 : vector<16x1xf32> to vector<16x128xf32>
    %41 = arith.subf %35, %40 : vector<16x128xf32>
    %42 = math.exp %41 : vector<16x128xf32>
    %c0_11 = arith.constant 0 : index
    %c0_12 = arith.constant 0 : index
    %43 = vector.load %arg9[%c0_11, %c0_12] : memref<16x1xf32, #tpu.memory_space<vmem>>, vector<16x1xf32>
    %44 = arith.subf %36, %39 : vector<16x1xf32>
    %45 = math.exp %44 : vector<16x1xf32>
    %46 = arith.mulf %43, %45 : vector<16x1xf32>
    %cst_13 = arith.constant dense<0.000000e+00> : vector<16xf32>
    %47 = vector.multi_reduction <add>, %42, %cst_13 [1] : vector<16x128xf32> to vector<16xf32>
    %48 = vector.shape_cast %47 : vector<16xf32> to vector<16x1xf32>
    %49 = arith.addf %46, %48 : vector<16x1xf32>
    %c0_14 = arith.constant 0 : index
    %c0_15 = arith.constant 0 : index
    %50 = vector.load %arg9[%c0_14, %c0_15] : memref<16x1xf32, #tpu.memory_space<vmem>>, vector<16x1xf32>
    tpu.vector_store %arg9[%c0_14, %c0_15], %49 {strides = array<i32>} : memref<16x1xf32, #tpu.memory_space<vmem>>, vector<16x1xf32>,
    %c0_16 = arith.constant 0 : index
    %c0_17 = arith.constant 0 : index
    %51 = vector.load %arg8[%c0_16, %c0_17] : memref<16x1xf32, #tpu.memory_space<vmem>>, vector<16x1xf32>
    tpu.vector_store %arg8[%c0_16, %c0_17], %39 {strides = array<i32>} : memref<16x1xf32, #tpu.memory_space<vmem>>, vector<16x1xf32>,
    %52 = tpu.iota {dimensions = array<i32: 1>} : vector<16x128xi32>
    %c128_i32 = arith.constant 128 : i32
    %53 = arith.muli %arg1, %c128_i32 : i32
    %54 = vector.broadcast %53 : i32 to vector<16x128xi32>
    %55 = arith.addi %52, %54 : vector<16x128xi32>
    %c0_18 = arith.constant 0 : index
    %c0_19 = arith.constant 0 : index
    %56 = vector.load %arg5[%c0_18, %c0_19] : memref<16x1xi32, #tpu.memory_space<vmem>>, vector<16x1xi32>
    %57 = vector.broadcast %56 : vector<16x1xi32> to vector<16x128xi32>
    %58 = arith.cmpi eq, %55, %57 : vector<16x128xi32>
    %59 = arith.extui %58 : vector<16x128xi1> to vector<16x128xi32>
    %60 = arith.sitofp %59 : vector<16x128xi32> to vector<16x128xf32>
    %c0_20 = arith.constant 0 : index
    %c0_21 = arith.constant 0 : index
    %61 = vector.load %arg10[%c0_20, %c0_21] : memref<16x1xf32, #tpu.memory_space<vmem>>, vector<16x1xf32>
    %62 = arith.mulf %60, %32 : vector<16x128xf32>
    %cst_22 = arith.constant dense<0.000000e+00> : vector<16xf32>
    %63 = vector.multi_reduction <add>, %62, %cst_22 [1] : vector<16x128xf32> to vector<16xf32>
    %64 = vector.shape_cast %63 : vector<16xf32> to vector<16x1xf32>
    %65 = arith.addf %61, %64 : vector<16x1xf32>
    %c0_23 = arith.constant 0 : index
    %c0_24 = arith.constant 0 : index
    %66 = vector.load %arg10[%c0_23, %c0_24] : memref<16x1xf32, #tpu.memory_space<vmem>>, vector<16x1xf32>
    tpu.vector_store %arg10[%c0_23, %c0_24], %65 {strides = array<i32>} : memref<16x1xf32, #tpu.memory_space<vmem>>, vector<16x1xf32>,
    %c0_i32_25 = arith.constant 0 : i32
    %67 = arith.cmpi eq, %arg1, %c0_i32_25 : i32
    %68 = arith.extui %67 : i1 to i32
    %c0_i32_26 = arith.constant 0 : i32
    %69 = arith.cmpi ne, %68, %c0_i32_26 : i32
    scf.if %69 {
      %c0_27 = arith.constant 0 : index
      %c0_28 = arith.constant 0 : index
      %70 = vector.load %arg8[%c0_27, %c0_28] : memref<16x1xf32, #tpu.memory_space<vmem>>, vector<16x1xf32>
      %c0_29 = arith.constant 0 : index
      %c0_30 = arith.constant 0 : index
      %71 = vector.load %arg9[%c0_29, %c0_30] : memref<16x1xf32, #tpu.memory_space<vmem>>, vector<16x1xf32>
      %72 = math.log %71 : vector<16x1xf32>
      %73 = arith.addf %70, %72 : vector<16x1xf32>
      %c0_31 = arith.constant 0 : index
      %c0_32 = arith.constant 0 : index
      %74 = vector.load %arg10[%c0_31, %c0_32] : memref<16x1xf32, #tpu.memory_space<vmem>>, vector<16x1xf32>
      %75 = arith.subf %73, %74 : vector<16x1xf32>
      %c0_33 = arith.constant 0 : index
      %c0_34 = arith.constant 0 : index
      %76 = vector.load %arg6[%c0_33, %c0_34] : memref<16x1xf32, #tpu.memory_space<vmem>>, vector<16x1xf32>
      %77 = arith.mulf %75, %76 : vector<16x1xf32>
      %c0_35 = arith.constant 0 : index
      %c0_36 = arith.constant 0 : index
      %78 = vector.load %arg7[%c0_35, %c0_36] : memref<16x1xf32, #tpu.memory_space<vmem>>, vector<16x1xf32>
      tpu.vector_store %arg7[%c0_35, %c0_36], %77 {strides = array<i32>} : memref<16x1xf32, #tpu.memory_space<vmem>>, vector<16x1xf32>,
    } else {
    }
    return
  }
  func.func @transform_0(%arg0: i32, %arg1: i32) -> (i32, i32) {
    %c0_i32 = arith.constant 0 : i32
    %c0_i32_0 = arith.constant 0 : i32
    return %arg0, %c0_i32 : i32, i32
  }
  func.func @transform_1(%arg0: i32, %arg1: i32) -> (i32, i32, i32) {
    %c0_i32 = arith.constant 0 : i32
    %c0_i32_0 = arith.constant 0 : i32
    %c0_i32_1 = arith.constant 0 : i32
    return %arg1, %c0_i32, %c0_i32_0 : i32, i32, i32
  }
  func.func @transform_2(%arg0: i32, %arg1: i32) -> (i32, i32) {
    %c0_i32 = arith.constant 0 : i32
    %c0_i32_0 = arith.constant 0 : i32
    return %c0_i32, %arg1 : i32, i32
  }
  func.func @transform_3(%arg0: i32, %arg1: i32) -> (i32, i32) {
    %c0_i32 = arith.constant 0 : i32
    %c0_i32_0 = arith.constant 0 : i32
    return %arg0, %c0_i32 : i32, i32
  }
  func.func @transform_4(%arg0: i32, %arg1: i32) -> (i32, i32) {
    %c0_i32 = arith.constant 0 : i32
    %c0_i32_0 = arith.constant 0 : i32
    return %arg0, %c0_i32 : i32, i32
  }
  func.func @transform_5(%arg0: i32, %arg1: i32) -> (i32, i32) {
    %c0_i32 = arith.constant 0 : i32
    %c0_i32_0 = arith.constant 0 : i32
    return %arg0, %c0_i32 : i32, i32
  }
}

</mosaic_0001>

<bundles_post_ra>
// kernel: tpu_custom_call.1
= control target key start
LH: loop header
LB: loop body
LE: loop exit
PB: predicated region body
PF: predicated region fallthrough
CT: control target
= control target key end

     0   :  { %10 = vsyncpa [#allocation6], 0  ;;  %s656_s18 = smov [#allocation5]   ;;  %s749_s0 = inlined_call_operand.vmem [shape: bf16[16,128], index: 0, kind: input, shape index: {}]   ;;  %s750_s1 = inlined_call_operand.hbm [shape: bf16[1,384,128], index: 1, kind: input, shape index: {}]   ;;  %s751_s2 = inlined_call_operand.vmem [shape: f32[1,128], index: 2, kind: input, shape index: {}]   ;;  %s752_s3 = inlined_call_operand.vmem [shape: s32[16,1], index: 3, kind: input, shape index: {}]   ;;  %s753_s4 = inlined_call_operand.vmem [shape: f32[16,1], index: 4, kind: input, shape index: {}]   ;;  %s754_s5 = inlined_call_operand.vmem [shape: f32[16,1], index: 5, kind: output, shape index: {}]  }
   0x1   :  { %s18_s19 = sshll.u32 %s656_s18, 4  ;;  %s19_s19 = int_to_ptr.vmem [resolvable:$true] %s18_s19 }
   0x2   :  { %s642_s20 = scalar_lea.vmem %s19_s19, 3072  ;;  %p647_p1 = scmp.lt.s32.totalorder %s19_s19, %s19_s19 }
   0x3   :  { %p643_p0 = scmp.ne.s32.totalorder %s19_s19, %s642_s20  ;;  %p648_p2 = scmp.lt.s32.totalorder %s642_s20, %s642_s20 }
   0x5   :  { %p649_p3 = por %p648_p2, %p647_p1 }
   0x7   :  { %p650_p4 = pnand %p649_p3, %p643_p0 }
   0x9   :  { %653 = shalt.err (!%p650_p4)
}
   0xa   :  { %s657_s21 = smov 64   ;;  %s658_s22 = smov 4  }
   0xb   :  { %24 = dma.hbm_to_vmem [thread:$0]  %s750_s1, 3072, %s19_s19, [#allocation6], %s657_s21, %s657_s21, %s658_s22  }
   0xc   :  { %654 = dma.done.wait [#allocation6], 3072  }
   0xd   :  { %655 = vsyncadd [#allocation6], 4294964224  ;;  %v659_v0 = vmov 0.0   ;;  %vm660_vm0 = vmmov 0   ;;  %v577_v1 = vld [vmem:[#allocation5 + $0x78] sm:$0xff]   ;;  %v580_v4 = vld [vmem:[#allocation5 + $0x70] sm:$0xff]  }
   0xe   :  { %548 = vmatprep.subr.bf16.mxu1 %v659_v0  ;;  %564 = vmatprep.mubr.msk.bf16.mxu1 %vm660_vm0, %v659_v0  ;;  %v578_v2 = vld [vmem:[#allocation5 + $0xb8] sm:$0xff]   ;;  %v581_v5 = vld [vmem:[#allocation5 + $0xb0] sm:$0xff]   ;;  %v583_v7 = vld [vmem:[#allocation5 + $0x68] sm:$0xff]   ;;  %v661_v26 = vmov 0   ;;  %vm39_vm1 = vcmask 7168  }
   0xf   :  { %521 = vmatprep.subr.bf16.mxu0 %v577_v1  ;;  %v579_v3 = vld [vmem:[#allocation5 + $0x38] sm:$0xff]   ;;  %549 = vmatpush3.bf16.xpose.msra.mxu1 %v578_v2  ;;  %v582_v6 = vld [vmem:[#allocation5 + $0x30] sm:$0xff]   ;;  %v584_v8 = vld [vmem:[#allocation5 + $0xa8] sm:$0xff]   ;;  %v662_v27 = vmov -1e+30   ;;  %42 = vst.msk [vmem:[#allocation3] sm:$0xff] %vm39_vm1, %v659_v0 }
  0x10   :  { %522 = vmatpush3.bf16.xpose.msra.mxu0 %v579_v3  ;;  %550 = vmatprep.subr.bf16.mxu1 %v659_v0  ;;  %v585_v9 = vld [vmem:[#allocation5 + $0x28] sm:$0xff]   ;;  %v586_v10 = vld [vmem:[#allocation5 + $0x60] sm:$0xff]   ;;  %v601_v13 = vld [vmem:[%s749_s0] sm:$0xff]   ;;  %40 = vst.msk [vmem:[#allocation2] sm:$0xff] %vm39_vm1, %v662_v27 }
  0x11   :  { %523 = vmatprep.subr.bf16.mxu0 %v580_v4  ;;  %v587_v11 = vld [vmem:[#allocation5 + $0xa0] sm:$0xff]   ;;  %v589_v14 = vld [vmem:[#allocation5 + $0x58] sm:$0xff]   ;;  %537 = vmatprep.mubr.bf16.mxu0 %v601_v13  ;;  %v592_v17 = vld [vmem:[#allocation5 + $0x50] sm:$0xff]   ;;  %41 = vst.msk [vmem:[#allocation2 + $0x8] sm:$0xff] %vm39_vm1, %v662_v27 }
  0x12   :  { %v588_v12 = vld [vmem:[#allocation5 + $0x20] sm:$0xff]   ;;  %v590_v15 = vld [vmem:[#allocation5 + $0x98] sm:$0xff]   ;;  %v593_v18 = vld [vmem:[#allocation5 + $0x90] sm:$0xff]   ;;  %576 = vset.pattern.permute.xlu0 %v661_v26  ;;  %575 = vset.pattern.permute.xlu1 %v661_v26  ;;  %43 = vst.msk [vmem:[#allocation3 + $0x8] sm:$0xff] %vm39_vm1, %v659_v0 }
  0x13   :  { %v591_v16 = vld [vmem:[#allocation5 + $0x18] sm:$0xff]   ;;  %v594_v19 = vld [vmem:[#allocation5 + $0x10] sm:$0xff]   ;;  %v595_v20 = vld [vmem:[#allocation5 + $0x48] sm:$0xff]   ;;  %44 = vst.msk [vmem:[#allocation4] sm:$0xff] %vm39_vm1, %v659_v0 }
  0x14   :  { %v596_v21 = vld [vmem:[#allocation5 + $0x88] sm:$0xff]   ;;  %v598_v23 = vld [vmem:[#allocation5 + $0x40] sm:$0xff]   ;;  %45 = vst.msk [vmem:[#allocation4 + $0x8] sm:$0xff] %vm39_vm1, %v659_v0  ;;  %v439_v26 = vld [vmem:[%s752_s3] sm:$0xff] }
  0x15   :  { %v597_v22 = vld [vmem:[#allocation5 + $0x8] sm:$0xff]   ;;  %v599_v24 = vld [vmem:[#allocation5 + $0x80] sm:$0xff]  }
  0x16   :  { %v600_v25 = vld [vmem:[#allocation5] sm:$0xff]  }
  0x17   :  { %551 = vmatpush3.bf16.xpose.msra.mxu1 %v581_v5  ;;  %v389_v27 = vld [vmem:[#allocation2] sm:$0xff] }
  0x18   :  { %524 = vmatpush3.bf16.xpose.msra.mxu0 %v582_v6  ;;  %552 = vmatprep.subr.bf16.mxu1 %v659_v0 }
  0x19   :  { %525 = vmatprep.subr.bf16.mxu0 %v583_v7 }
  0x1f   :  { %553 = vmatpush3.bf16.xpose.msra.mxu1 %v584_v8 }
  0x20   :  { %526 = vmatpush3.bf16.xpose.msra.mxu0 %v585_v9  ;;  %554 = vmatprep.subr.bf16.mxu1 %v659_v0 }
  0x21   :  { %527 = vmatprep.subr.bf16.mxu0 %v586_v10 }
  0x27   :  { %555 = vmatpush3.bf16.xpose.msra.mxu1 %v587_v11 }
  0x28   :  { %528 = vmatpush3.bf16.xpose.msra.mxu0 %v588_v12  ;;  %556 = vmatprep.subr.bf16.mxu1 %v659_v0 }
  0x29   :  { %529 = vmatprep.subr.bf16.mxu0 %v589_v14 }
  0x2f   :  { %557 = vmatpush3.bf16.xpose.msra.mxu1 %v590_v15 }
  0x30   :  { %530 = vmatpush3.bf16.xpose.msra.mxu0 %v591_v16  ;;  %558 = vmatprep.subr.bf16.mxu1 %v659_v0 }
  0x31   :  { %531 = vmatprep.subr.bf16.mxu0 %v592_v17 }
  0x37   :  { %559 = vmatpush3.bf16.xpose.msra.mxu1 %v593_v18  ;;  %v518_v18 = vld [vmem:[%s751_s2] ss:$0 sm:$0xff] }
  0x38   :  { %532 = vmatpush3.bf16.xpose.msra.mxu0 %v594_v19  ;;  %560 = vmatprep.subr.bf16.mxu1 %v659_v0 }
  0x39   :  { %533 = vmatprep.subr.bf16.mxu0 %v595_v20 }
  0x3f   :  { %561 = vmatpush3.bf16.xpose.msra.mxu1 %v596_v21 }
  0x40   :  { %534 = vmatpush3.bf16.xpose.msra.mxu0 %v597_v22  ;;  %562 = vmatprep.subr.bf16.mxu1 %v659_v0 }
  0x41   :  { %535 = vmatprep.subr.bf16.mxu0 %v598_v23 }
  0x47   :  { %563 = vmatpush3.bf16.xpose.msra.mxu1 %v599_v24 }
  0x48   :  { %536 = vmatpush3.bf16.xpose.msra.mxu0 %v600_v25 }
  0x4e   :  { %565 = vmatmul.mubr.bf16.vlgmr.msra.gmra.mxu1 %v601_v13 }
  0x4f   :  { %538 = vmatmul.mubr.bf16.vlgmr.msra.gmra.mxu0 %v601_v13 }
 0x10e   :  { %v323_v28 = vpop.f32.mrf.mxu1 }
 0x10f   :  { %v280_v29 = vpop.f32.mrf.mxu0 }
 0x110   :  { %v566_v30 = vpop.f32.mrf.mxu1 }
 0x111   :  { %v282_v31 = vpop.f32.mrf.mxu0 }
 0x112   :  { %v330_v32 = vmax.f32 %v280_v29, %v282_v31  ;;  %v326_v33 = vpop.f32.mrf.mxu1 }
 0x113   :  { %v284_v34 = vpop.f32.mrf.mxu0 }
 0x114   :  { %v332_v35 = vsub.f32 %v280_v29, %v330_v32  ;;  %v338_v36 = vsub.f32 %v282_v31, %v330_v32  ;;  %v352_v37 = vmax.f32 %v330_v32, %v323_v28  ;;  %v567_v38 = vpop.f32.mrf.mxu1 }
 0x115   :  { %v286_v39 = vpop.f32.mrf.mxu0 }
 0x116   :  { %v334_v40 = vmul.f32 1.442695, %v332_v35  ;;  %v340_v41 = vmul.f32 1.442695, %v338_v36  ;;  %v354_v42 = vsub.f32 %v330_v32, %v352_v37  ;;  %v360_v43 = vsub.f32 %v323_v28, %v352_v37  ;;  %v440_v36 = vld [vmem:[%s752_s3 + $0x8] sm:$0xff] }
 0x117   :  { %v331_v44 = vmax.f32 %v284_v34, %v286_v39 }
 0x118   :  { %602 = vpow2.f32 %v334_v40  ;;  %v356_v45 = vmul.f32 1.442695, %v354_v42  ;;  %v362_v46 = vmul.f32 1.442695, %v360_v43 }
 0x119   :  { %604 = vpow2.f32 %v340_v41  ;;  %v333_v47 = vsub.f32 %v284_v34, %v331_v44  ;;  %v339_v48 = vsub.f32 %v286_v39, %v331_v44  ;;  %v353_v49 = vmax.f32 %v331_v44, %v326_v33 }
 0x11a   :  { %606 = vpow2.f32 %v356_v45 }
 0x11b   :  { %v336_v50 = vmul.f32 1.442695, %v333_v47  ;;  %v342_v51 = vmul.f32 1.442695, %v339_v48  ;;  %v355_v52 = vsub.f32 %v331_v44, %v353_v49  ;;  %608 = vpow2.f32 %v362_v46 }
 0x11c   :  { %v361_v53 = vsub.f32 %v326_v33, %v353_v49 }
 0x11d   :  { %610 = vpow2.f32 %v336_v50  ;;  %v358_v54 = vmul.f32 1.442695, %v355_v52  ;;  %v453_v52 = vld [vmem:[#allocation4] sm:$0xff] }
 0x11e   :  { %612 = vpow2.f32 %v342_v51  ;;  %v364_v55 = vmul.f32 1.442695, %v361_v53 }
 0x11f   :  { %614 = vpow2.f32 %v358_v54 }
 0x120   :  { %616 = vpow2.f32 %v364_v55 }
 0x125   :  { %v603_v56 = vpop.eup %602 }
 0x126   :  { %v605_v57 = vpop.eup %604  ;;  %v346_v4 = vmul.f32 %v603_v56, %v280_v29 }
 0x127   :  { %v607_v58 = vpop.eup %606  ;;  %v344_v59 = vadd.f32 %v605_v57, %v603_v56  ;;  %v348_v5 = vmul.f32 %v605_v57, %v282_v31  ;;  %v390_v31 = vld [vmem:[#allocation2 + $0x8] sm:$0xff] }
 0x128   :  { %v609_v60 = vpop.eup %608 }
 0x129   :  { %v366_v61 = vmul.f32 %v607_v58, %v344_v59  ;;  %v350_v9 = vadd.f32 %v348_v5, %v346_v4  ;;  %v372_v14 = vmul.f32 %v609_v60, %v323_v28 }
 0x12a   :  { %v611_v62 = vpop.eup %610 }
 0x12b   :  { %v613_v63 = vpop.eup %612  ;;  %v368_v1 = vadd.f32 %v609_v60, %v366_v61  ;;  %v347_v10 = vmul.f32 %v611_v62, %v284_v34  ;;  %v370_v12 = vmul.f32 %v607_v58, %v350_v9  ;;  %v434_v34 = vlaneseq  ;;  %v413_v58 = vld [vmem:[#allocation3] sm:$0xff] }
 0x12c   :  { %v615_v2 = vpop.eup %614  ;;  %v345_v3 = vadd.f32 %v613_v63, %v611_v62  ;;  %v349_v11 = vmul.f32 %v613_v63, %v286_v39  ;;  %v414_v63 = vld [vmem:[#allocation3 + $0x8] sm:$0xff] }
 0x12d   :  { %618 = vrcp.f32 %v368_v1  ;;  %v617_v7 = vpop.eup %616  ;;  %v374_v15 = vadd.f32 %v372_v14, %v370_v12  ;;  %v435_v37 = vand.u32 127, %v434_v34 }
 0x12e   :  { %v367_v6 = vmul.f32 %v615_v2, %v345_v3  ;;  %v351_v13 = vadd.f32 %v349_v11, %v347_v10  ;;  %v373_v20 = vmul.f32 %v617_v7, %v326_v33  ;;  %v454_v3 = vld [vmem:[#allocation4 + $0x8] sm:$0xff] }
 0x130   :  { %v369_v8 = vadd.f32 %v617_v7, %v367_v6  ;;  %v371_v17 = vmul.f32 %v615_v2, %v351_v13  ;;  %v482_v13 = vld [vmem:[%s753_s4] sm:$0xff] }
 0x132   :  { %620 = vrcp.f32 %v369_v8  ;;  %v375_v22 = vadd.f32 %v373_v20, %v371_v17  ;;  %v483_v20 = vld [vmem:[%s753_s4 + $0x8] sm:$0xff] }
 0x13a   :  { %v619_v16 = vpop.eup %618 }
 0x13b   :  { %v378_v19 = vmul.f32 %v619_v16, %v374_v15 }
 0x13d   :  { %v387_v21 = vadd.f32 %v518_v18, %v378_v19 }
 0x13f   :  { %v621_v23 = vpop.eup %620  ;;  %391 = vmax.xlane.f32.xlu0 %v387_v21 }
 0x140   :  { %v379_v24 = vmul.f32 %v621_v23, %v375_v22 }
 0x142   :  { %v388_v25 = vadd.f32 %v518_v18, %v379_v24 }
 0x144   :  { %393 = vmax.xlane.f32.xlu0 %v388_v25 }
 0x15a   :  { %442 = vperm.xlu0 %576, %v439_v26  }
 0x1c8   :  { %v392_v28 = vpop.xlane.xlu0 %391 }
 0x1c9   :  { %v395_v29 = vmax.f32 %v389_v27, %v392_v28 }
 0x1cb   :  { %v415_v30 = vsub.f32 %v389_v27, %v395_v29  ;;  %432 = vst.msk [vmem:[#allocation2] sm:$0xff] %vm39_vm1, %v395_v29  ;;  %399 = vperm.xlu1 %575, %v395_v29  }
 0x1cd   :  { %v394_v32 = vpop.xlane.xlu0 %393  ;;  %v417_v55 = vmul.f32 1.442695, %v415_v30 }
 0x1ce   :  { %v396_v33 = vmax.f32 %v390_v31, %v394_v32 }
 0x1d0   :  { %v416_v35 = vsub.f32 %v390_v31, %v396_v33  ;;  %433 = vst.msk [vmem:[#allocation2 + $0x8] sm:$0xff] %vm39_vm1, %v396_v33  ;;  %404 = vperm.xlu1 %575, %v396_v33  }
 0x1d2   :  { %v419_v56 = vmul.f32 1.442695, %v416_v35  ;;  %v468_v10 = vld [vmem:[#allocation2] sm:$0xff] }
 0x1d4   :  { %445 = vperm.xlu1 %575, %v440_v36  }
 0x1d5   :  { %v443_v38 = vpop.permute.xlu0 %442 }
 0x1d6   :  { %vm447_vm2 = vcmp.eq.s32.totalorder %v435_v37, %v443_v38 }
 0x1d7   :  { %v519_v39 = vsel %vm447_vm2, 1.0, %v659_v0  ;;  %v469_v17 = vld [vmem:[#allocation2 + $0x8] sm:$0xff] }
 0x1d8   :  { %v455_v40 = vmul.f32 %v519_v39, %v378_v19 }
 0x1da   :  { %457 = vadd.xlane.f32.xlu0 %v455_v40 }
 0x246   :  { %v400_v41 = vpop.permute.xlu1 %399 }
 0x247   :  { %v407_v42 = vsub.f32 %v387_v21, %v400_v41 }
 0x249   :  { %v409_v43 = vmul.f32 1.442695, %v407_v42 }
 0x24b   :  { %622 = vpow2.f32 %v409_v43  ;;  %v405_v44 = vpop.permute.xlu1 %404 }
 0x24c   :  { %v408_v45 = vsub.f32 %v388_v25, %v405_v44 }
 0x24e   :  { %v411_v46 = vmul.f32 1.442695, %v408_v45 }
 0x24f   :  { %v446_v47 = vpop.permute.xlu1 %445 }
 0x250   :  { %624 = vpow2.f32 %v411_v46  ;;  %vm448_vm3 = vcmp.eq.s32.totalorder %v435_v37, %v446_v47 }
 0x251   :  { %v520_v50 = vsel %vm448_vm3, 1.0, %v659_v0  ;;  %626 = vpow2.f32 %v417_v55 }
 0x252   :  { %v456_v51 = vmul.f32 %v520_v50, %v379_v24  ;;  %628 = vpow2.f32 %v419_v56 }
 0x258   :  { %v623_v48 = vpop.eup %622 }
 0x259   :  { %423 = vadd.xlane.f32.xlu1 %v623_v48 }
 0x25d   :  { %v625_v49 = vpop.eup %624 }
 0x25e   :  { %425 = vadd.xlane.f32.xlu1 %v625_v49  ;;  %v627_v57 = vpop.eup %626 }
 0x25f   :  { %v421_v59 = vmul.f32 %v627_v57, %v413_v58  ;;  %v629_v61 = vpop.eup %628 }
 0x260   :  { %v422_v0 = vmul.f32 %v629_v61, %v414_v63 }
 0x262   :  { %459 = vadd.xlane.f32.xlu1 %v456_v51 }
 0x263   :  { %v458_v53 = vpop.xlane.xlu0 %457 }
 0x264   :  { %v461_v54 = vadd.f32 %v458_v53, %v453_v52 }
 0x266   :  { %463 = vst.msk [vmem:[#allocation4] sm:$0xff] %vm39_vm1, %v461_v54 }
 0x26d   :  { %v478_v12 = vld [vmem:[#allocation4] sm:$0xff] }
 0x2e2   :  { %v424_v60 = vpop.xlane.xlu1 %423 }
 0x2e3   :  { %v427_v62 = vadd.f32 %v424_v60, %v421_v59 }
 0x2e5   :  { %430 = vst.msk [vmem:[#allocation3] sm:$0xff] %vm39_vm1, %v427_v62 }
 0x2e7   :  { %v426_v1 = vpop.xlane.xlu1 %425 }
 0x2e8   :  { %v428_v2 = vadd.f32 %v426_v1, %v422_v0 }
 0x2ea   :  { %431 = vst.msk [vmem:[#allocation3 + $0x8] sm:$0xff] %vm39_vm1, %v428_v2 }
 0x2eb   :  { %v460_v4 = vpop.xlane.xlu1 %459 }
 0x2ec   :  { %v470_v5 = vld [vmem:[#allocation3] sm:$0xff]  ;;  %v462_v6 = vadd.f32 %v460_v4, %v454_v3 }
 0x2ed   :  { %630 = vlog2.f32 %v470_v5 }
 0x2ee   :  { %464 = vst.msk [vmem:[#allocation4 + $0x8] sm:$0xff] %vm39_vm1, %v462_v6 }
 0x2f1   :  { %v471_v7 = vld [vmem:[#allocation3 + $0x8] sm:$0xff] }
 0x2f2   :  { %632 = vlog2.f32 %v471_v7 }
 0x2f5   :  { %v479_v21 = vld [vmem:[#allocation4 + $0x8] sm:$0xff] }
 0x2fa   :  { %v631_v8 = vpop.eup %630 }
 0x2fb   :  { %v473_v9 = vmul.f32 0.6931472, %v631_v8 }
 0x2fd   :  { %v476_v11 = vadd.f32 %v473_v9, %v468_v10 }
 0x2ff   :  { %v633_v14 = vpop.eup %632  ;;  %v480_v15 = vsub.f32 %v476_v11, %v478_v12 }
 0x300   :  { %v475_v16 = vmul.f32 0.6931472, %v633_v14 }
 0x301   :  { %v484_v18 = vmul.f32 %v482_v13, %v480_v15 }
 0x302   :  { %v477_v19 = vadd.f32 %v475_v16, %v469_v17 }
 0x303   :  { %486 = vst.msk [vmem:[%s754_s5] sm:$0xff] %vm39_vm1, %v484_v18 }
 0x304   :  { %v481_v22 = vsub.f32 %v477_v19, %v479_v21 }
 0x306   :  { %v485_v23 = vmul.f32 %v483_v20, %v481_v22 }
 0x308   :  { %487 = vst.msk [vmem:[%s754_s5 + $0x8] sm:$0xff] %vm39_vm1, %v485_v23 }
 0x309   :  { %492 = vsyncpa [#allocation6], 1 }

</bundles_post_ra>
